<compile_context>
chip_gen: v7x
topology: tpu7x:2x2x1
jax: 0.10.0
libtpu: 0.0.40
codegen_flags: <defaults>
</compile_context>

<pallas_src>
import functools

import jax
import jax.numpy as jnp
from jax import lax
from jax.experimental import pallas as pl
from jax.experimental.pallas import tpu as pltpu

EXPANSION = 1
BN_EPS = 1e-5
_M_TARGET = 128  # target flattened M (= R*Wo) per MXU matmul


def _vmem_limit_bytes():
    """Generation-aware scoped-VMEM request (<= 3/4 physical, <= 64 MiB)."""
    try:
        cap = pltpu.get_tpu_info().vmem_capacity_bytes
    except Exception:
        cap = 64 * 1024 * 1024  # conservative fallback (safe on v5e/v6e/v7x)
    return int(min(64 * 1024 * 1024, (cap * 3) // 4))


def _pick_row_block(ho, wo, target=_M_TARGET):
    """Smallest divisor R of `ho` with R*Wo >= target (else the whole height)."""
    for r in range(1, ho + 1):
        if ho % r == 0 and r * wo >= target:
            return r
    return ho


# ----------------------------------------------------------------------------
# Pallas kernels
# ----------------------------------------------------------------------------
def _conv3x3_acc(x_ref, w_ref, stride, r_blk, wo):
    """f32 (R*Wo, Cout) accumulator of a 3x3 conv for one output row block.

    x_ref : (1, Hs, Wo, 3*Cin) bf16 -- dx taps pre-merged along channels and W
            already strided; Hs = stride*Ho + 2 padded input rows.
    w_ref : (3, 3*Cin, Cout) bf16 -- BN scale folded in, indexed by dy.
    The dy taps / H stride are handled with leading-dim row slices, so one row
    block is 3 MXU matmuls with M = R*Wo and K = 3*Cin.
    """
    k = x_ref.shape[3]
    row0 = pl.program_id(1) * (stride * r_blk)
    acc = None
    for dy in range(3):  # static, fully unrolled
        if stride == 1:
            xdy = x_ref[0, pl.ds(row0 + dy, r_blk), :, :]
        else:
            # Contiguous over-read of stride*R rows, then keep every stride-th
            # (cheap leading-dim reshape/select, no strided VMEM access).
            xdy = x_ref[0, pl.ds(row0 + dy, stride * r_blk), :, :]
            xdy = xdy.reshape(r_blk, stride, wo, k)[:, 0]
        part = jnp.dot(xdy.reshape(r_blk * wo, k), w_ref[dy],
                       preferred_element_type=jnp.float32)
        acc = part if acc is None else acc + part
    return acc


def _conv_bn_kernel(x_ref, w_ref, b_ref, o_ref, *, stride, relu):
    """out = relu?( conv3x3(x) * bn_scale + bn_bias ); scale pre-folded into w."""
    r_blk, wo, cout = o_ref.shape[1], o_ref.shape[2], o_ref.shape[3]
    out = _conv3x3_acc(x_ref, w_ref, stride, r_blk, wo) + b_ref[...]
    if relu:
        out = jnp.maximum(out, 0.0)
    o_ref[...] = out.reshape(1, r_blk, wo, cout).astype(o_ref.dtype)


def _conv_bn_add_identity_kernel(x_ref, w_ref, b_ref, sc_ref, o_ref):
    """out = relu( conv3x3_bn(h1) + x ) -- identity shortcut (plain add)."""
    r_blk, wo, cout = o_ref.shape[1], o_ref.shape[2], o_ref.shape[3]
    out = _conv3x3_acc(x_ref, w_ref, 1, r_blk, wo) + b_ref[...]
    out = out + sc_ref[...].reshape(r_blk * wo, cout).astype(jnp.float32)
    o_ref[...] = jnp.maximum(out, 0.0).reshape(
        1, r_blk, wo, cout).astype(o_ref.dtype)


def _conv_bn_add_proj_kernel(x_ref, w_ref, b_ref, xs_ref, wsc_ref, bsc_ref,
                             o_ref):
    """out = relu( conv3x3_bn(h1) + conv1x1_bn(x_strided) ) -- fused shortcut."""
    r_blk, wo, cout = o_ref.shape[1], o_ref.shape[2], o_ref.shape[3]
    cin = xs_ref.shape[3]
    out = _conv3x3_acc(x_ref, w_ref, 1, r_blk, wo) + b_ref[...]
    sc = jnp.dot(xs_ref[...].reshape(r_blk * wo, cin), wsc_ref[...],
                 preferred_element_type=jnp.float32) + bsc_ref[...]
    o_ref[...] = jnp.maximum(out + sc, 0.0).reshape(
        1, r_blk, wo, cout).astype(o_ref.dtype)


# ----------------------------------------------------------------------------
# Pallas wrappers (grid = (batch, output-row blocks))
# ----------------------------------------------------------------------------
def _merged_dx_input(x_nhwc, stride, ho, wo):
    """Pad H/W and merge the 3 dx-shifted, W-strided views along channels.

    Returns ONE (N, stride*Ho + 2, Wo, 3*Cin) bf16 array; K = 3*Cin is the
    contraction dim of a single dy tap inside the kernel.
    """
    n, h, w, _ = x_nhwc.shape
    hs = stride * ho + 2
    ws = stride * (wo - 1) + 3
    xp = jnp.pad(x_nhwc.astype(jnp.bfloat16),
                 ((0, 0), (1, hs - h - 1), (1, ws - w - 1), (0, 0)))
    views = [xp[:, :, dx:dx + stride * (wo - 1) + 1:stride, :]
             for dx in range(3)]
    return jnp.concatenate(views, axis=-1)


def conv3x3_bn(x, w3, bias, *, stride, relu, out_dtype):
    """Fused 3x3 conv (pad=1, given stride) + folded BN (+ ReLU)."""
    n, h, w, _ = x.shape
    ho = (h - 1) // stride + 1
    wo = (w - 1) // stride + 1
    k, cout = w3.shape[1], w3.shape[2]
    xk = _merged_dx_input(x, stride, ho, wo)
    hs = xk.shape[1]
    r = _pick_row_block(ho, wo)

    kern = functools.partial(_conv_bn_kernel, stride=stride, relu=relu)
    return pl.pallas_call(
        kern,
        out_shape=jax.ShapeDtypeStruct((n, ho, wo, cout), out_dtype),
        grid_spec=pltpu.PrefetchScalarGridSpec(
            num_scalar_prefetch=0,
            grid=(n, ho // r),
            in_specs=[pl.BlockSpec((1, hs, wo, k), lambda b, j: (b, 0, 0, 0)),
                      pl.BlockSpec((3, k, cout), lambda b, j: (0, 0, 0)),
                      pl.BlockSpec((1, cout), lambda b, j: (0, 0))],
            out_specs=pl.BlockSpec((1, r, wo, cout), lambda b, j: (b, j, 0, 0)),
        ),
        compiler_params=pltpu.CompilerParams(
            dimension_semantics=("parallel", "parallel"),
            vmem_limit_bytes=_vmem_limit_bytes()),
    )(xk, w3, bias)


def conv3x3_bn_residual(h1, w3, bias, sc, wsc=None, bsc=None):
    """Fused tail: conv3x3(h1)+BN + shortcut (1x1 conv+BN or identity) + ReLU."""
    n, ho, wo, _ = h1.shape
    k, cout = w3.shape[1], w3.shape[2]
    xk = _merged_dx_input(h1, 1, ho, wo)
    hs = xk.shape[1]
    r = _pick_row_block(ho, wo)

    xspec = pl.BlockSpec((1, hs, wo, k), lambda b, j: (b, 0, 0, 0))
    wspec = pl.BlockSpec((3, k, cout), lambda b, j: (0, 0, 0))
    bspec = pl.BlockSpec((1, cout), lambda b, j: (0, 0))
    scspec = pl.BlockSpec((1, r, wo, sc.shape[-1]), lambda b, j: (b, j, 0, 0))
    ospec = pl.BlockSpec((1, r, wo, cout), lambda b, j: (b, j, 0, 0))

    if wsc is None:
        kern = _conv_bn_add_identity_kernel
        in_specs = [xspec, wspec, bspec, scspec]
        args = (xk, w3, bias, sc)
    else:
        csc = wsc.shape[0]
        kern = _conv_bn_add_proj_kernel
        in_specs = [xspec, wspec, bspec, scspec,
                    pl.BlockSpec((csc, cout), lambda b, j: (0, 0)), bspec]
        args = (xk, w3, bias, sc, wsc, bsc)

    return pl.pallas_call(
        kern,
        out_shape=jax.ShapeDtypeStruct((n, ho, wo, cout), jnp.float32),
        grid_spec=pltpu.PrefetchScalarGridSpec(
            num_scalar_prefetch=0,
            grid=(n, ho // r),
            in_specs=in_specs,
            out_specs=ospec,
        ),
        compiler_params=pltpu.CompilerParams(
            dimension_semantics=("parallel", "parallel"),
            vmem_limit_bytes=_vmem_limit_bytes()),
    )(*args)


# ----------------------------------------------------------------------------
# BasicBlock forward (Pallas) and pure-JAX reference
# ----------------------------------------------------------------------------
def basic_block_forward(x_nchw, q, stride):
    x = jnp.transpose(x_nchw, (0, 2, 3, 1))                 # NCHW -> NHWC, f32
    # conv1: 3x3 (stride) + BN + ReLU, bf16 intermediate
    h1 = conv3x3_bn(x, q["w1"], q["b1"], stride=stride, relu=True,
                    out_dtype=jnp.bfloat16)
    # conv2: 3x3 (stride 1) + BN, fused with shortcut + residual add + ReLU
    if q["has_sc"]:
        xs = x[:, ::stride, ::stride, :].astype(jnp.bfloat16)
        out = conv3x3_bn_residual(h1, q["w2"], q["b2"], xs, q["wsc"], q["bsc"])
    else:
        out = conv3x3_bn_residual(h1, q["w2"], q["b2"], x)  # identity shortcut
    return jnp.transpose(out, (0, 3, 1, 2))                 # -> NCHW


def basic_block_reference(x_nchw, p, stride):
    """Pure-JAX f32 reference with identical eval-mode BN folding."""
    x = jnp.transpose(x_nchw, (0, 2, 3, 1))

    def conv(xx, w_oihw, s, b, st, pad, relu):
        w = jnp.transpose(w_oihw, (2, 3, 1, 0))              # OIHW -> HWIO
        y = lax.conv_general_dilated(
            xx, w, (st, st), ((pad, pad), (pad, pad)),
            dimension_numbers=("NHWC", "HWIO", "NHWC"))
        y = y * s.reshape(1, 1, 1, -1) + b.reshape(1, 1, 1, -1)
        return jnp.maximum(y, 0.0) if relu else y

    h1 = conv(x, p["w1"], p["s1"], p["b1"], stride, 1, True)
    h2 = conv(h1, p["w2"], p["s2"], p["b2"], 1, 1, False)
    sc = (conv(x, p["wsc"], p["ssc"], p["bsc"], stride, 0, False)
          if p["has_sc"] else x)
    out = jnp.maximum(h2 + sc, 0.0)
    return jnp.transpose(out, (0, 3, 1, 2))


# ----------------------------------------------------------------------------
# Deterministic parameter init + one-time kernel-ready prep
# ----------------------------------------------------------------------------
def _fold_bn(gamma, beta, mean, var):
    scale = gamma / jnp.sqrt(var + BN_EPS)
    bias = beta - mean * scale
    return scale, bias


def init_params(key, in_planes, planes, stride):
    """PyTorch-layout params (OIHW weights + eval-mode-folded BN affine)."""
    out_planes = EXPANSION * planes
    ks = jax.random.split(key, 6)

    def bn(k, c):
        k1, k2, k3, k4 = jax.random.split(k, 4)
        gamma = jax.random.uniform(k1, (c,), jnp.float32, 0.5, 1.5)
        beta = 0.1 * jax.random.normal(k2, (c,), jnp.float32)
        mean = 0.1 * jax.random.normal(k3, (c,), jnp.float32)
        var = jax.random.uniform(k4, (c,), jnp.float32, 0.5, 1.5)
        return _fold_bn(gamma, beta, mean, var)

    p = {"has_sc": (stride != 1 or in_planes != out_planes)}
    p["w1"] = 0.1 * jax.random.normal(ks[0], (planes, in_planes, 3, 3),
                                      jnp.float32)
    p["s1"], p["b1"] = bn(ks[1], planes)
    p["w2"] = 0.1 * jax.random.normal(ks[2], (out_planes, planes, 3, 3),
                                      jnp.float32)
    p["s2"], p["b2"] = bn(ks[3], out_planes)
    if p["has_sc"]:
        p["wsc"] = 0.1 * jax.random.normal(ks[4], (out_planes, in_planes, 1, 1),
                                           jnp.float32)
        p["ssc"], p["bsc"] = bn(ks[5], out_planes)
    return p


def _fold_3x3_weight(w_oihw, scale):
    """(Cout, Cin, 3, 3) OIHW -> (3, 3*Cin, Cout) bf16, BN scale folded in.

    K index ordering is dx*Cin + c, matching the wrapper's merged-dx input.
    """
    cout, cin = w_oihw.shape[:2]
    w = jnp.transpose(w_oihw, (2, 3, 1, 0))          # (dy, dx, Cin, Cout)
    w = w.reshape(3, 3 * cin, cout)                  # (dy, dx*Cin + c, Cout)
    return (w * scale.reshape(1, 1, cout)).astype(jnp.bfloat16)


def prepare_params(p):
    """One-time kernel-ready weight prep (hoisted out of the forward path)."""
    q = {"has_sc": p["has_sc"]}
    q["w1"] = _fold_3x3_weight(p["w1"], p["s1"])
    q["b1"] = p["b1"].reshape(1, -1).astype(jnp.float32)
    q["w2"] = _fold_3x3_weight(p["w2"], p["s2"])
    q["b2"] = p["b2"].reshape(1, -1).astype(jnp.float32)
    if p["has_sc"]:
        wsc = p["wsc"][:, :, 0, 0].T * p["ssc"].reshape(1, -1)
        q["wsc"] = wsc.astype(jnp.bfloat16)
        q["bsc"] = p["bsc"].reshape(1, -1).astype(jnp.float32)
    return q


if __name__ == "__main__":
    key = jax.random.PRNGKey(0)
    configs = [
        (4, 8, 2),   # downsample block -> fused 1x1 conv+BN shortcut (stride 2)
        (8, 8, 1),   # identity-shortcut block (stride 1, in_planes == planes)
    ]
    for cfg_idx, (in_planes, planes, stride) in enumerate(configs):
        k_x, k_p = jax.random.split(jax.random.fold_in(key, cfg_idx))
        x = jax.random.normal(k_x, (2, in_planes, 16, 16), jnp.float32)  # NCHW
        params = init_params(k_p, in_planes, planes, stride)
        prepped = prepare_params(params)

        out = basic_block_forward(x, prepped, stride)
        out = jax.block_until_ready(out)

        ref = basic_block_reference(x, params, stride)
        expect = (2, EXPANSION * planes, 16 // stride, 16 // stride)
        assert out.shape == expect, (out.shape, expect)
        assert jnp.allclose(out, ref, rtol=5e-2, atol=7e-2), (
            "mismatch vs reference", float(jnp.max(jnp.abs(out - ref))))

    print("KERNEL_OK")
</pallas_src>

<mosaic_0001>
module attributes {stable_mosaic.version = 11 : i64} {
  func.func @_conv_bn_kernel(%arg0: i32, %arg1: i32, %arg2: memref<1x18x8x12xbf16, #tpu.memory_space<vmem>>, %arg3: memref<3x12x8xbf16, #tpu.memory_space<vmem>>, %arg4: memref<1x8xf32, #tpu.memory_space<vmem>>, %arg5: memref<1x8x8x8xbf16, #tpu.memory_space<vmem>>) attributes {dimension_semantics = [#tpu.dimension_semantics<parallel>, #tpu.dimension_semantics<parallel>], iteration_bounds = array<i64: 2, 1>, scalar_prefetch = 0 : i64, scratch_operands = 0 : i64, tpu.core_type = #tpu.core_type<tc>, window_params = [{transform_indices = @transform_0, window_bounds = array<i64: 1, 18, 8, 12>}, {pipeline_mode = #tpu.pipeline_mode<synchronous>, transform_indices = @transform_1, window_bounds = array<i64: 3, 12, 8>}, {pipeline_mode = #tpu.pipeline_mode<synchronous>, transform_indices = @transform_2, window_bounds = array<i64: 1, 8>}, {transform_indices = @transform_3, window_bounds = array<i64: 1, 8, 8, 8>}]} {
    %c16_i32 = arith.constant 16 : i32
    %0 = arith.muli %arg1, %c16_i32 : i32
    %c0_i32 = arith.constant 0 : i32
    %1 = arith.addi %0, %c0_i32 : i32
    %c0 = arith.constant 0 : index
    %2 = arith.index_cast %1 : i32 to index
    %c0_0 = arith.constant 0 : index
    %c0_1 = arith.constant 0 : index
    %3 = vector.load %arg2[%c0, %2, %c0_0, %c0_1] : memref<1x18x8x12xbf16, #tpu.memory_space<vmem>>, vector<1x16x8x12xbf16>
    %4 = vector.shape_cast %3 : vector<1x16x8x12xbf16> to vector<16x8x12xbf16>
    %5 = vector.shape_cast %4 : vector<16x8x12xbf16> to vector<8x2x8x12xbf16>
    %6 = vector.extract_strided_slice %5 {offsets = [0, 0, 0, 0], sizes = [8, 1, 8, 12], strides = [1, 1, 1, 1]} : vector<8x2x8x12xbf16> to vector<8x1x8x12xbf16>
    %7 = vector.shape_cast %6 : vector<8x1x8x12xbf16> to vector<8x8x12xbf16>
    %8 = vector.shape_cast %7 : vector<8x8x12xbf16> to vector<64x12xbf16>
    %c0_2 = arith.constant 0 : index
    %c0_3 = arith.constant 0 : index
    %c0_4 = arith.constant 0 : index
    %9 = vector.load %arg3[%c0_2, %c0_3, %c0_4] : memref<3x12x8xbf16, #tpu.memory_space<vmem>>, vector<1x12x8xbf16>
    %10 = vector.shape_cast %9 : vector<1x12x8xbf16> to vector<12x8xbf16>
    %cst = arith.constant dense<0.000000e+00> : vector<64x8xf32>
    %11 = tpu.matmul %8, %10, %cst {dimension_numbers = #tpu.dot_dimension_numbers<[1], [0], [0], [1], [0, 0, 1, 1], [], []>} : vector<64x12xbf16>, vector<12x8xbf16>, vector<64x8xf32> -> vector<64x8xf32>
    %c1_i32 = arith.constant 1 : i32
    %12 = arith.addi %0, %c1_i32 : i32
    %c0_5 = arith.constant 0 : index
    %13 = arith.index_cast %12 : i32 to index
    %c0_6 = arith.constant 0 : index
    %c0_7 = arith.constant 0 : index
    %14 = vector.load %arg2[%c0_5, %13, %c0_6, %c0_7] : memref<1x18x8x12xbf16, #tpu.memory_space<vmem>>, vector<1x16x8x12xbf16>
    %15 = vector.shape_cast %14 : vector<1x16x8x12xbf16> to vector<16x8x12xbf16>
    %16 = vector.shape_cast %15 : vector<16x8x12xbf16> to vector<8x2x8x12xbf16>
    %17 = vector.extract_strided_slice %16 {offsets = [0, 0, 0, 0], sizes = [8, 1, 8, 12], strides = [1, 1, 1, 1]} : vector<8x2x8x12xbf16> to vector<8x1x8x12xbf16>
    %18 = vector.shape_cast %17 : vector<8x1x8x12xbf16> to vector<8x8x12xbf16>
    %19 = vector.shape_cast %18 : vector<8x8x12xbf16> to vector<64x12xbf16>
    %c1 = arith.constant 1 : index
    %c0_8 = arith.constant 0 : index
    %c0_9 = arith.constant 0 : index
    %20 = vector.load %arg3[%c1, %c0_8, %c0_9] : memref<3x12x8xbf16, #tpu.memory_space<vmem>>, vector<1x12x8xbf16>
    %21 = vector.shape_cast %20 : vector<1x12x8xbf16> to vector<12x8xbf16>
    %cst_10 = arith.constant dense<0.000000e+00> : vector<64x8xf32>
    %22 = tpu.matmul %19, %21, %cst_10 {dimension_numbers = #tpu.dot_dimension_numbers<[1], [0], [0], [1], [0, 0, 1, 1], [], []>} : vector<64x12xbf16>, vector<12x8xbf16>, vector<64x8xf32> -> vector<64x8xf32>
    %23 = arith.addf %11, %22 : vector<64x8xf32>
    %c2_i32 = arith.constant 2 : i32
    %24 = arith.addi %0, %c2_i32 : i32
    %c0_11 = arith.constant 0 : index
    %25 = arith.index_cast %24 : i32 to index
    %c0_12 = arith.constant 0 : index
    %c0_13 = arith.constant 0 : index
    %26 = vector.load %arg2[%c0_11, %25, %c0_12, %c0_13] : memref<1x18x8x12xbf16, #tpu.memory_space<vmem>>, vector<1x16x8x12xbf16>
    %27 = vector.shape_cast %26 : vector<1x16x8x12xbf16> to vector<16x8x12xbf16>
    %28 = vector.shape_cast %27 : vector<16x8x12xbf16> to vector<8x2x8x12xbf16>
    %29 = vector.extract_strided_slice %28 {offsets = [0, 0, 0, 0], sizes = [8, 1, 8, 12], strides = [1, 1, 1, 1]} : vector<8x2x8x12xbf16> to vector<8x1x8x12xbf16>
    %30 = vector.shape_cast %29 : vector<8x1x8x12xbf16> to vector<8x8x12xbf16>
    %31 = vector.shape_cast %30 : vector<8x8x12xbf16> to vector<64x12xbf16>
    %c2 = arith.constant 2 : index
    %c0_14 = arith.constant 0 : index
    %c0_15 = arith.constant 0 : index
    %32 = vector.load %arg3[%c2, %c0_14, %c0_15] : memref<3x12x8xbf16, #tpu.memory_space<vmem>>, vector<1x12x8xbf16>
    %33 = vector.shape_cast %32 : vector<1x12x8xbf16> to vector<12x8xbf16>
    %cst_16 = arith.constant dense<0.000000e+00> : vector<64x8xf32>
    %34 = tpu.matmul %31, %33, %cst_16 {dimension_numbers = #tpu.dot_dimension_numbers<[1], [0], [0], [1], [0, 0, 1, 1], [], []>} : vector<64x12xbf16>, vector<12x8xbf16>, vector<64x8xf32> -> vector<64x8xf32>
    %35 = arith.addf %23, %34 : vector<64x8xf32>
    %c0_17 = arith.constant 0 : index
    %c0_18 = arith.constant 0 : index
    %36 = vector.load %arg4[%c0_17, %c0_18] : memref<1x8xf32, #tpu.memory_space<vmem>>, vector<1x8xf32>
    %37 = vector.broadcast %36 : vector<1x8xf32> to vector<64x8xf32>
    %38 = arith.addf %35, %37 : vector<64x8xf32>
    %cst_19 = arith.constant 0.000000e+00 : f32
    %39 = vector.broadcast %cst_19 : f32 to vector<64x8xf32>
    %40 = arith.maximumf %38, %39 : vector<64x8xf32>
    %41 = vector.shape_cast %40 : vector<64x8xf32> to vector<1x8x8x8xf32>
    %42 = arith.truncf %41 : vector<1x8x8x8xf32> to vector<1x8x8x8xbf16>
    %c0_20 = arith.constant 0 : index
    %c0_21 = arith.constant 0 : index
    %c0_22 = arith.constant 0 : index
    %c0_23 = arith.constant 0 : index
    %43 = vector.load %arg5[%c0_20, %c0_21, %c0_22, %c0_23] : memref<1x8x8x8xbf16, #tpu.memory_space<vmem>>, vector<1x8x8x8xbf16>
    tpu.vector_store %arg5[%c0_20, %c0_21, %c0_22, %c0_23], %42 {strides = array<i32>} : memref<1x8x8x8xbf16, #tpu.memory_space<vmem>>, vector<1x8x8x8xbf16>,
    return
  }
  func.func @transform_0(%arg0: i32, %arg1: i32) -> (i32, i32, i32, i32) {
    %c0_i32 = arith.constant 0 : i32
    %c0_i32_0 = arith.constant 0 : i32
    %c0_i32_1 = arith.constant 0 : i32
    %c0_i32_2 = arith.constant 0 : i32
    return %arg0, %c0_i32, %c0_i32_0, %c0_i32_1 : i32, i32, i32, i32
  }
  func.func @transform_1(%arg0: i32, %arg1: i32) -> (i32, i32, i32) {
    %c0_i32 = arith.constant 0 : i32
    %c0_i32_0 = arith.constant 0 : i32
    %c0_i32_1 = arith.constant 0 : i32
    %c0_i32_2 = arith.constant 0 : i32
    return %c0_i32, %c0_i32_0, %c0_i32_1 : i32, i32, i32
  }
  func.func @transform_2(%arg0: i32, %arg1: i32) -> (i32, i32) {
    %c0_i32 = arith.constant 0 : i32
    %c0_i32_0 = arith.constant 0 : i32
    %c0_i32_1 = arith.constant 0 : i32
    return %c0_i32, %c0_i32_0 : i32, i32
  }
  func.func @transform_3(%arg0: i32, %arg1: i32) -> (i32, i32, i32, i32) {
    %c0_i32 = arith.constant 0 : i32
    %c0_i32_0 = arith.constant 0 : i32
    %c0_i32_1 = arith.constant 0 : i32
    return %arg0, %arg1, %c0_i32, %c0_i32_0 : i32, i32, i32, i32
  }
}

</mosaic_0001>

<bundles_post_ra>
// kernel: tpu_custom_call.1
= control target key start
LH: loop header
LB: loop body
LE: loop exit
PB: predicated region body
PF: predicated region fallthrough
CT: control target
= control target key end

     0   :  { %8 = vsyncpa [#allocation3], 0  ;;  %s1163_s0 = inlined_call_operand.vmem [shape: bf16[2,18,8,12], index: 0, kind: input, shape index: {}]   ;;  %s1164_s1 = inlined_call_operand.vmem [shape: bf16[3,12,8], index: 1, kind: input, shape index: {}]   ;;  %s1165_s2 = inlined_call_operand.vmem [shape: f32[1,8], index: 2, kind: input, shape index: {}]   ;;  %s1166_s3 = inlined_call_operand.hbm [shape: bf16[2,8,8,8], index: 3, kind: output, shape index: {}]  }
   0x1   :  { %10 = vsyncpa [#allocation3 + $0x1], 0  ;;  %s994_s12 = smov 0   ;;  %s996_s13 = smov 0  }
   0x2   :  { %s998_s14 = smov 0   ;;  %s1000_s15 = smov 0  }
   0x3   :  { %s1002_s16 = smov 0   ;;  %s1004_s17 = smov 0  }
   0x4 LB: > { %s690_s18 = sadd.s32 4294967295, %s969_s17   ;;  %s691_s19 = sadd.s32 4294967294, %s969_s17   ;;  %s969_s17 = sphi %s1004_s17, %s16_s17   ;;  %s965_s16 = sphi %s1002_s16, %s1173_s16   ;;  %s961_s15 = sphi %s1000_s15, %s1172_s15   ;;  %s957_s14 = sphi %s998_s14, %s1171_s14   ;;  %s953_s13 = sphi %s996_s13, %s1170_s13   ;;  %s949_s12 = sphi %s994_s12, %s1169_s12  }
   0x5   : > { %s28_s20 = sadd.s32 1, %s965_s16  ;;  %s105_s21 = sadd.s32 1, %s957_s14 }
   0x6   : > { %p30_p0 = scmp.ge.s32.totalorder %s28_s20, 2  ;;  %p115_p1 = scmp.ne.s32.totalorder %s957_s14, %s953_s13 }
   0x7   : > { %p116_p2 = scmp.eq.s32.totalorder %s690_s18, 1  ;;  %p121_p3 = scmp.ne.s32.totalorder %s953_s13, %s949_s12 }
   0x8   : > { %s1175_s20 = smov (%p30_p0, %s28_s20), 0  ;;  %p122_p5 = scmp.eq.s32.totalorder %s691_s19, 1 }
   0x9   : > { %p1034_p4 = por %p116_p2, %p115_p1  ;;  %s100_s23 = ssub.s32 %s965_s16, %s1175_s20 }
   0xa   : > { %p694_p6 = scmp.ge.s32.totalorder %s969_s17, 1  ;;  %p103_p7 = scmp.eq.s32.totalorder %s100_s23, 0 }
   0xb   : > { %p1041_p8 = por %p122_p5, %p121_p3  ;;  %p154_p9 = scmp.lt.s32.totalorder %s969_s17, 3 }
   0xc   : > { %s1047_s25 = scalar_select %p103_p7, %s957_s14, %s105_s21  }
   0xd   : > { %p155_p10 = pnand %p694_p6, %p154_p9 }
   0xe   : > { %v876_v0 = vld [vmem:[%s1164_s1 + $0x8] sm:$0x3f] (!%p155_p10)   ;;  %vm250_vm0 = vcmask (!%p155_p10), 1045504   ;;  %p178_p11 = scmp.lt.s32.totalorder (!%p155_p10), %s961_s15, 1  ;;  %v877_v1 = vld [vmem:[%s1164_s1] sm:$0x3f] (!%p155_p10)  }
   0xf   : > { %158 = sbr.rel (%p155_p10) target bundleno = 287 (0x11f), region = 32  ;;  %814 = vmatprep.subr.msk.bf16.mxu1 (!%p155_p10), %vm250_vm0, %v876_v0  ;;  %v252_v2 = vsel (!%p155_p10), %vm250_vm0, %v876_v0, 0  ;;  %v880_v3 = vld [vmem:[%s1164_s1 + $0x10] sm:$0x3f] (!%p155_p10)   ;;  %815 = vmatprep.subr.msk.bf16.mxu0 (!%p155_p10), %vm250_vm0, %v877_v1  ;;  %v357_v4 = vsel (!%p155_p10), %vm250_vm0, %v877_v1, 0  ;;  %vm237_vm1 = vcmask (!%p155_p10), 97280  }
  0x10   : > { %767 = vmatpush3.bf16.msra.mxu1 (!%p155_p10), %v252_v2  ;;  %777 = vmatpush3.bf16.msra.mxu0 (!%p155_p10), %v357_v4  ;;  %v476_v5 = vsel (!%p155_p10), %vm250_vm0, %v880_v3, 0  ;;  %s175_s10 = sand.u32 (!%p155_p10), 1, %s953_s13   ;;  %v744_v23 = vld [vmem:[%s1165_s2] ss:$0 sm:$0xff] (!%p155_p10)  ;;  %vm582_vm2 = vcmask (!%p155_p10), 60416   ;;  %s750_s23 = sshll.u32 (!%p155_p10), %s961_s15, 9 }
  0x11   : > { %816 = vmatprep.subr.msk.bf16.mxu1 (!%p155_p10), %vm250_vm0, %v877_v1  ;;  %817 = vmatprep.subr.msk.bf16.mxu0 (!%p155_p10), %vm250_vm0, %v880_v3  ;;  %s695_s19 = sshll.u32 (!%p155_p10), %s175_s10, 5  ;;  %s1105_s29 = scalar_lea.hbm (!%p155_p10), %s1166_s3, %s750_s23 }
  0x12   : > { %s1088_s21 = scalar_lea.vmem (!%p155_p10), [#allocation2], %s695_s19  ;;  %s971_s4 = smov (!%p155_p10), [#allocation2]  }
  0x13   : > { %s607_s26 = sshll.u32 (!%p155_p10), %s1088_s21, 4  ;;  %s895_s5 = sshll.u32 (!%p155_p10), %s971_s4, 4  ;;  %s1107_s26 = int_to_ptr.vmem [resolvable:$true] %s607_s26  ;;  %s896_s5 = int_to_ptr.vmem [resolvable:$false] %s895_s5 }
  0x14   : > { %p898_p1 = scmp.lt.s32.totalorder (!%p155_p10), %s1107_s26, %s896_s5 }
  0x16   : > { %s179_s30 = scalar_select %p178_p11, %s961_s15, 1 }
  0x17   : > { %s1117_s15 = scalar_lea.sflag [#allocation3], %s175_s10 }
  0x18   : > { %s818_s6 = smul.u32 72, %s179_s30  ;;  %s891_s30 = scalar_lea.vmem %s1107_s26, 512 }
  0x19   : > { %p892_p12 = scmp.ne.s32.totalorder %s1107_s26, %s891_s30 }
  0x1a   : > { %s182_s9 = scalar_lea.vmem %s1163_s0, %s818_s6  ;;  %s897_s6 = scalar_lea.vmem %s896_s5, 1024 }
  0x1b   : > { %v878_v6 = vld [vmem:[%s182_s9 + $0x4] ss:$8 sps:$4 sm:$0xff]   ;;  %v879_v7 = vld [vmem:[%s182_s9] ss:$8 sps:$4 sm:$0xff]   ;;  %v881_v8 = vld [vmem:[%s182_s9 + $0x14] ss:$8 sps:$4 sm:$0xff]   ;;  %p893_p13 = pnand %p892_p12, %p1034_p4  ;;  %p899_p2 = scmp.lt.s32.totalorder %s897_s6, %s891_s30 }
  0x1c   : > { %768 = vmatprep.mubr.msk.bf16.mxu1 %vm237_vm1, %v878_v6  ;;  %778 = vmatprep.mubr.msk.bf16.mxu0 %vm237_vm1, %v879_v7  ;;  %v882_v9 = vld [vmem:[%s182_s9 + $0x10] ss:$8 sps:$4 sm:$0xff]   ;;  %v883_v10 = vld [vmem:[%s182_s9 + $0x24] ss:$8 sps:$4 sm:$0xff]   ;;  %v884_v12 = vld [vmem:[%s182_s9 + $0x34] ss:$8 sps:$4 sm:$0xff]  }
  0x1d   : > { %769 = vmatmul.mubr.msk.bf16.vlgmr.msra.gmra.mrb[0].mxu1 %vm237_vm1, %v881_v8  ;;  %779 = vmatmul.mubr.msk.bf16.vlgmr.msra.gmra.mrb[0].mxu0 %vm237_vm1, %v882_v9  ;;  %v885_v11 = vld [vmem:[%s182_s9 + $0x8] ss:$8 sps:$4 sm:$0xff]   ;;  %v886_v14 = vld [vmem:[%s182_s9 + $0x18] ss:$8 sps:$4 sm:$0xff]   ;;  %p894_p0 = pneg %p893_p13  ;;  %p900_p3 = por %p899_p2, %p898_p1 }
  0x1e   : > { %797 = vmatpush3.bf16.msra.mxu1 %v357_v4  ;;  %787 = vmatpush3.bf16.msra.mxu0 %v476_v5  ;;  %v887_v13 = vld [vmem:[%s182_s9 + $0x20] ss:$8 sps:$4 sm:$0xff]   ;;  %v889_v16 = vld [vmem:[%s182_s9 + $0x30] ss:$8 sps:$4 sm:$0xff]  }
  0x1f   : > { %772 = vmatprep.mubr.msk.bf16.mxu1 %vm237_vm1, %v883_v10  ;;  %788 = vmatprep.mubr.msk.bf16.mxu0 %vm237_vm1, %v885_v11  ;;  %v888_v15 = vld [vmem:[%s182_s9 + $0x28] ss:$8 sps:$4 sm:$0xff]   ;;  %v890_v17 = vld [vmem:[%s182_s9 + $0x38] ss:$8 sps:$4 sm:$0xff]   ;;  %p901_p5 = pnand %p900_p3, %p894_p0 }
  0x25   : > { %773 = vmatmul.mubr.msk.bf16.gmra.mrb[4].mxu1 %vm237_vm1, %v884_v12 }
  0x26   : > { %782 = vmatprep.mubr.msk.bf16.mxu1 %vm237_vm1, %v887_v13 }
  0x29   : > { %789 = vmatmul.mubr.msk.bf16.vlgmr.msra.gmra.mrb[0].mxu0 %vm237_vm1, %v886_v14 }
  0x2a   : > { %792 = vmatprep.mubr.msk.bf16.mxu0 %vm237_vm1, %v888_v15 }
  0x31   : > { %783 = vmatmul.mubr.msk.bf16.vlgmr.msra.gmra.mrb[4].mxu1 %vm237_vm1, %v889_v16  ;;  %793 = vmatmul.mubr.msk.bf16.gmra.mrb[4].mxu0 %vm237_vm1, %v890_v17 }
  0xf0   : > { %v770_v18 = vpop.f32.mrb[0].mxu1 }
  0xf1   : > { %v288_v19 = vpop.f32.mrb[1].mxu1 }
  0xf2   : > { %v771_v20 = vpop.f32.mrb[2].mxu1 }
  0xf3   : > { %v291_v21 = vpop.f32.mrb[3].mxu1 }
  0xfc   : > { %v790_v22 = vpop.f32.mrb[0].mxu0 }
  0xfd   : > { %v798_v24 = vadd.f32 %v790_v22, %v770_v18  ;;  %v512_v25 = vpop.f32.mrb[1].mxu0 }
  0xfe   : > { %v799_v26 = vadd.f32 %v512_v25, %v288_v19  ;;  %v791_v27 = vpop.f32.mrb[2].mxu0 }
  0xff   : > { %v560_v28 = vadd.f32 %v798_v24, %v744_v23  ;;  %v800_v29 = vadd.f32 %v791_v27, %v771_v20  ;;  %v515_v30 = vpop.f32.mrb[3].mxu0 }
 0x100   : > { %v558_v31 = vadd.f32 %v799_v26, %v744_v23  ;;  %v801_v32 = vadd.f32 %v515_v30, %v291_v21 }
 0x101   : > { %v568_v33 = vmax.f32 %v560_v28, 0.0  ;;  %v561_v34 = vadd.f32 %v800_v29, %v744_v23 }
 0x102   : > { %v566_v35 = vmax.f32 %v558_v31, 0.0  ;;  %v559_v36 = vadd.f32 %v801_v32, %v744_v23 }
 0x103   : > { %v576_v37 = vpack.c.bf16 %v568_v33, %v568_v33  ;;  %v569_v38 = vmax.f32 %v561_v34, 0.0 }
 0x104   : > { %v784_v39 = vpop.f32.mrb[4].mxu1  ;;  %v574_v40 = vpack.c.bf16 %v566_v35, %v566_v35  ;;  %v567_v41 = vmax.f32 %v559_v36, 0.0  ;;  %v794_v42 = vpop.f32.mrb[4].mxu0 }
 0x105   : > { %v409_v43 = vpop.f32.mrb[5].mxu1  ;;  %585 = vst.msk [vmem:[%s1088_s21 + $0x8] sm:$0xf] %vm582_vm2, %v576_v37  ;;  %v577_v44 = vpack.c.bf16 %v569_v38, %v569_v38  ;;  %v802_v45 = vadd.f32 %v794_v42, %v784_v39  ;;  %v528_v46 = vpop.f32.mrb[5].mxu0 }
 0x106   : > { %v785_v47 = vpop.f32.mrb[6].mxu1  ;;  %583 = vst.msk [vmem:[%s1088_s21] sm:$0xf] %vm582_vm2, %v574_v40  ;;  %v575_v48 = vpack.c.bf16 %v567_v41, %v567_v41  ;;  %v803_v49 = vadd.f32 %v528_v46, %v409_v43  ;;  %v795_v50 = vpop.f32.mrb[6].mxu0 }
 0x107   : > { %v412_v51 = vpop.f32.mrb[7].mxu1  ;;  %586 = vst.msk [vmem:[%s1088_s21 + $0xc] sm:$0xf] %vm582_vm2, %v577_v44  ;;  %v564_v52 = vadd.f32 %v802_v45, %v744_v23  ;;  %v804_v53 = vadd.f32 %v795_v50, %v785_v47  ;;  %v531_v54 = vpop.f32.mrb[7].mxu0 }
 0x108   : > { %584 = vst.msk [vmem:[%s1088_s21 + $0x4] sm:$0xf] %vm582_vm2, %v575_v48  ;;  %v562_v55 = vadd.f32 %v803_v49, %v744_v23  ;;  %v805_v56 = vadd.f32 %v531_v54, %v412_v51 }
 0x109   : > { %v572_v57 = vmax.f32 %v564_v52, 0.0  ;;  %v565_v58 = vadd.f32 %v804_v53, %v744_v23 }
 0x10a   : > { %v570_v59 = vmax.f32 %v562_v55, 0.0  ;;  %v563_v60 = vadd.f32 %v805_v56, %v744_v23 }
 0x10b   : > { %v580_v61 = vpack.c.bf16 %v572_v57, %v572_v57  ;;  %v573_v62 = vmax.f32 %v565_v58, 0.0 }
 0x10c   : > { %v578_v63 = vpack.c.bf16 %v570_v59, %v570_v59  ;;  %v571_v0 = vmax.f32 %v563_v60, 0.0 }
 0x10d   : > { %589 = vst.msk [vmem:[%s1088_s21 + $0x18] sm:$0xf] %vm582_vm2, %v580_v61  ;;  %v581_v1 = vpack.c.bf16 %v573_v62, %v573_v62 }
 0x10e   : > { %587 = vst.msk [vmem:[%s1088_s21 + $0x10] sm:$0xf] %vm582_vm2, %v578_v63  ;;  %v579_v2 = vpack.c.bf16 %v571_v0, %v571_v0 }
 0x10f   : > { %590 = vst.msk [vmem:[%s1088_s21 + $0x1c] sm:$0xf] %vm582_vm2, %v581_v1 }
 0x110   : > { %588 = vst.msk [vmem:[%s1088_s21 + $0x14] sm:$0xf] %vm582_vm2, %v579_v2 }
 0x111   : > { %904 = shalt.err (!%p901_p5)
}
 0x112   : > { %s905_s7 = scalar_lea.hbm %s1105_s29, 512  ;;  %s909_s10 = scalar_lea.hbm %s1166_s3, 1024 }
 0x113   : > { %p906_p6 = scmp.ne.s32.totalorder %s1105_s29, %s905_s7  ;;  %p910_p10 = scmp.lt.u32.totalorder %s1105_s29, %s1166_s3 }
 0x114   : > { %p911_p11 = scmp.lt.u32.totalorder %s909_s10, %s905_s7  ;;  %p913_p13 = scmp.lt.u32.totalorder %s905_s7, %s1105_s29 }
 0x115   : > { %p907_p7 = pnand %p906_p6, %p1034_p4 }
 0x116   : > { %p912_p12 = por %p911_p11, %p910_p10 }
 0x117   : > { %p908_p9 = pneg %p907_p7 }
 0x118   : > { %p914_p0 = por %p913_p13, %p912_p12 }
 0x11a   : > { %p915_p1 = pnand %p914_p0, %p908_p9 }
 0x11c   : > { %918 = shalt.err (!%p915_p1)
}
 0x11d   : > { %s972_s19 = smov 64   ;;  %s973_s21 = smov 4  }
 0x11e   : > { %819 = dma.vmem_to_hbm [thread:$0]  (%p1034_p4), %s1107_s26, 512, %s1105_s29, %s1117_s15, %s972_s19, %s972_s19, %s973_s21  }
 0x11f PF: > { %p825_p2 = scmp.ge.s32.totalorder %s969_s17, 2  ;;  %s622_s23 = sand.u32 1, %s949_s12  }
 0x120   : > { %s623_s27 = scalar_lea.sflag [#allocation3], %s622_s23 }
 0x121   : > { %p822_p3 = pnand %p825_p2, %p1041_p8 }
 0x123   : > { %944 = dma.done.wait (!%p822_p3), %s623_s27, 512  }
 0x124   : > { %946 = vsyncadd (!%p822_p3), %s623_s27, 4294966784  ;;  %s16_s17 = sadd.s32 1, %s969_s17   ;;  %s1169_s12 = smov %s953_s13 }
 0x125   : > { %p13_p5 = scmp.ge.s32.totalorder %s16_s17, 4   ;;  %s1170_s13 = smov %s957_s14 }
 0x126   : > { %s1171_s14 = smov %s1047_s25  ;;  %s1172_s15 = smov %s965_s16 }
 0x127   : > { %s1173_s16 = smov %s1175_s20  ;;  %15 = sbr.rel (!%p13_p5) target bundleno = 4 (0x4), region = 72 }
 0x12e   :  { %628 = vsyncpa [#allocation3], 1 }
 0x12f   :  { %630 = vsyncpa [#allocation3 + $0x1], 1 }

</bundles_post_ra>
